<compile_context>
chip_gen: v6e
topology: v6e:2x2x1
jax: 0.10.0
libtpu: 0.0.40
codegen_flags: <defaults>
</compile_context>

<pallas_src>
import functools

import jax
import jax.numpy as jnp
from jax.experimental import pallas as pl
from jax.experimental.pallas import tpu as pltpu

NEG_SLOPE = 0.01        # torch.nn.LeakyReLU default
_TB_MAX = 32 * 1024     # max batch tile (lanes): x block = 16*tb*4 B = 2 MiB at the cap
_MIN_STEPS = 4          # >= 2 grid steps per TensorCore on v7x megacore


def _round_up(n, m):
    return ((n + m - 1) // m) * m


def _leaky_relu(x):
    # max(x, a*x) == LeakyReLU(x) for 0 < a < 1 (matches torch at x=0); 2 VPU ops.
    return jnp.maximum(x, NEG_SLOPE * x)


def _choose_tile(batch):
    """Batch tile: multiple of 128, <= _TB_MAX, aiming for >= _MIN_STEPS grid steps."""
    b128 = _round_up(max(batch, 1), 128)
    steps = max(_MIN_STEPS, pl.cdiv(b128, _TB_MAX))
    return min(_TB_MAX, max(128, _round_up(pl.cdiv(b128, steps), 128)))


def pack_fcnet_params(params):
    """Pack every layer's W/b into one small constant buffer.

    Layout (f32): each layer gets an 8-row-aligned row block holding W [fan_out,fan_in]
    in cols [0:fan_in] and b in the last column.  <2 KiB total for 16->8->8->4, so it
    stays VMEM-resident across all grid steps with a single startup DMA.
    Returns (packed, layer_meta, bias_col) with layer_meta = ((row0, fan_out, fan_in),...).
    """
    n_layers = sum(1 for k in params if k.startswith("w"))
    ws = [params[f"w{i}"] for i in range(1, n_layers + 1)]
    bs = [params[f"b{i}"] for i in range(1, n_layers + 1)]
    bias_col = max(int(w.shape[1]) for w in ws)
    n_cols = bias_col + 1
    n_rows = sum(_round_up(int(w.shape[0]), 8) for w in ws)
    packed = jnp.zeros((n_rows, n_cols), jnp.float32)
    meta, row = [], 0
    for w, b in zip(ws, bs):
        fan_out, fan_in = (int(s) for s in w.shape)
        packed = packed.at[row:row + fan_out, 0:fan_in].set(w.astype(jnp.float32))
        packed = packed.at[row:row + fan_out, bias_col].set(
            b.reshape(fan_out).astype(jnp.float32))
        meta.append((row, fan_out, fan_in))
        row += _round_up(fan_out, 8)
    return packed, tuple(meta), bias_col


def _fcnet_kernel(xT_ref, wpack_ref, oT_ref, *, layer_meta, bias_col):
    """Fused MLP, feature-major: batch on the lane axis -> lane-dense load/compute/store.

    xT_ref : (in_f, tb)   wpack_ref : (rows, bias_col+1)   oT_ref : (out_f, tb)
    """
    h = xT_ref[...]
    last = len(layer_meta) - 1
    for idx, (row0, fan_out, fan_in) in enumerate(layer_meta):
        w = wpack_ref[row0:row0 + fan_out, 0:fan_in]                  # (fan_out, fan_in)
        b = wpack_ref[row0:row0 + fan_out, bias_col:bias_col + 1]     # (fan_out, 1)
        h = jnp.dot(w, h, preferred_element_type=jnp.float32) + b
        if idx != last:
            h = _leaky_relu(h)
    oT_ref[...] = h.astype(oT_ref.dtype)


def _fcnet_pallas(xT, wpack, layer_meta, bias_col, tb):
    """Core call; xT must already be padded so xT.shape[1] % tb == 0."""
    in_f, bp = xT.shape
    assert bp % tb == 0 and tb % 128 == 0
    out_f = layer_meta[-1][1]
    kernel = functools.partial(_fcnet_kernel, layer_meta=layer_meta, bias_col=bias_col)
    return pl.pallas_call(
        kernel,
        out_shape=jax.ShapeDtypeStruct((out_f, bp), xT.dtype),
        grid_spec=pltpu.PrefetchScalarGridSpec(
            num_scalar_prefetch=0,
            grid=(bp // tb,),
            in_specs=[
                pl.BlockSpec((in_f, tb), lambda i: (0, i)),    # lane-dense x^T tile
                pl.BlockSpec(wpack.shape, lambda i: (0, 0)),   # constants, VMEM-resident
            ],
            out_specs=pl.BlockSpec((out_f, tb), lambda i: (0, i)),   # lane-dense store
        ),
        compiler_params=pltpu.CompilerParams(
            dimension_semantics=("parallel",),          # batch axis shards across TCs
            vmem_limit_bytes=28 * 1024 * 1024,          # under v7x 32 MiB scoped default
        ),
    )(xT, wpack)


def fcnet_forward_feature_major(xT, params, *, tb=None):
    """Preferred production contract: x^T [in_f, B] -> y^T [out_f, B]; no layout plumbing."""
    _, batch = xT.shape
    wpack, meta, bias_col = pack_fcnet_params(params)
    tb = tb or _choose_tile(batch)
    bp = pl.cdiv(batch, tb) * tb
    if bp != batch:                                   # single pad only for ragged batches
        xT = jnp.pad(xT, ((0, 0), (0, bp - batch)))
    yT = _fcnet_pallas(xT, wpack, meta, bias_col, tb)
    return yT if bp == batch else yT[:, :batch]


def fcnet_forward(x, params, *, tb=None):
    """PyTorch-semantics entry point: x [B, in_f] -> y [B, out_f].

    Call under jax.jit so the single pad+transpose fuses into one HBM pass.  For zero
    layout overhead, use fcnet_forward_feature_major with feature-major arrays.
    """
    batch, _ = x.shape
    wpack, meta, bias_col = pack_fcnet_params(params)
    tb = tb or _choose_tile(batch)
    bp = pl.cdiv(batch, tb) * tb
    xT = jnp.pad(x, ((0, bp - batch), (0, 0))).T      # ONE fused pad+transpose of x
    yT = _fcnet_pallas(xT, wpack, meta, bias_col, tb)
    return yT[:, :batch].T                            # tiny (out_f-wide) un-transpose


def init_fcnet_params(key, in_features, out_features, n_hidden=(8, 8)):
    """PyTorch-Linear-style init: uniform +-1/sqrt(fan_in); W [fan_out,fan_in], b [fan_out,1]."""
    hs = [in_features] + list(n_hidden) + [out_features]
    params = {}
    for idx, (h0, h1) in enumerate(zip(hs, hs[1:]), start=1):
        key, kw, kb = jax.random.split(key, 3)
        bound = 1.0 / (h0 ** 0.5)
        params[f"w{idx}"] = jax.random.uniform(
            kw, (h1, h0), jnp.float32, minval=-bound, maxval=bound)
        params[f"b{idx}"] = jax.random.uniform(
            kb, (h1, 1), jnp.float32, minval=-bound, maxval=bound)
    return params


def fcnet_reference(x, params):
    """Plain-JAX reference (standard [B, feat] layout)."""
    n = sum(1 for k in params if k.startswith("w"))
    h = x
    for i in range(1, n + 1):
        h = h @ params[f"w{i}"].T + params[f"b{i}"].T
        if i != n:
            h = jnp.where(h >= 0, h, NEG_SLOPE * h)
    return h


if __name__ == "__main__":
    key = jax.random.PRNGKey(0)
    in_features, out_features = 16, 4
    batch = 300   # not a multiple of 128 -> exercises the ragged-tail padding path

    kx, kp = jax.random.split(key)
    x = jax.random.normal(kx, (batch, in_features), jnp.float32)
    params = init_fcnet_params(kp, in_features, out_features, n_hidden=(8, 8))

    y_ref = fcnet_reference(x, params)

    # PyTorch-semantics path (fused pad+transpose wrapper).
    y = jax.block_until_ready(jax.jit(fcnet_forward)(x, params))
    assert y.shape == (batch, out_features)
    assert jnp.allclose(y, y_ref, atol=1e-5, rtol=1e-5), "batch-major path mismatch"

    # Feature-major path (recommended contract: no wrapper layout traffic at all).
    yT = jax.block_until_ready(jax.jit(fcnet_forward_feature_major)(x.T, params))
    assert yT.shape == (out_features, batch)
    assert jnp.allclose(yT.T, y_ref, atol=1e-5, rtol=1e-5), "feature-major path mismatch"

    # TODO(synk): monotonicity_loss (torch.autograd.grad of y wrt x) is a training-time
    # loss, not part of the forward pass; not implemented as a Pallas kernel.

    print("KERNEL_OK")
</pallas_src>

<mosaic_0001>
module attributes {stable_mosaic.version = 11 : i64} {
  func.func @_fcnet_kernel(%arg0: i32, %arg1: memref<16x128xf32, #tpu.memory_space<vmem>>, %arg2: memref<24x17xf32, #tpu.memory_space<vmem>>, %arg3: memref<4x128xf32, #tpu.memory_space<vmem>>) attributes {dimension_semantics = [#tpu.dimension_semantics<parallel>], iteration_bounds = array<i64: 3>, scalar_prefetch = 0 : i64, scratch_operands = 0 : i64, tpu.core_type = #tpu.core_type<tc>, window_params = [{transform_indices = @transform_0, window_bounds = array<i64: 16, 128>}, {pipeline_mode = #tpu.pipeline_mode<synchronous>, transform_indices = @transform_1, window_bounds = array<i64: 24, 17>}, {transform_indices = @transform_2, window_bounds = array<i64: 4, 128>}]} {
    %c0 = arith.constant 0 : index
    %c0_0 = arith.constant 0 : index
    %0 = vector.load %arg1[%c0, %c0_0] : memref<16x128xf32, #tpu.memory_space<vmem>>, vector<16x128xf32>
    %c0_1 = arith.constant 0 : index
    %c0_2 = arith.constant 0 : index
    %1 = vector.load %arg2[%c0_1, %c0_2] : memref<24x17xf32, #tpu.memory_space<vmem>>, vector<8x16xf32>
    %c0_3 = arith.constant 0 : index
    %c16 = arith.constant 16 : index
    %2 = vector.load %arg2[%c0_3, %c16] : memref<24x17xf32, #tpu.memory_space<vmem>>, vector<8x1xf32>
    %cst = arith.constant dense<0.000000e+00> : vector<8x128xf32>
    %3 = tpu.matmul %1, %0, %cst {dimension_numbers = #tpu.dot_dimension_numbers<[1], [0], [0], [1], [0, 0, 1, 1], [], []>} : vector<8x16xf32>, vector<16x128xf32>, vector<8x128xf32> -> vector<8x128xf32>
    %4 = vector.broadcast %2 : vector<8x1xf32> to vector<8x128xf32>
    %5 = arith.addf %3, %4 : vector<8x128xf32>
    %cst_4 = arith.constant 0.00999999977 : f32
    %6 = vector.broadcast %cst_4 : f32 to vector<8x128xf32>
    %7 = arith.mulf %6, %5 : vector<8x128xf32>
    %8 = arith.maximumf %5, %7 : vector<8x128xf32>
    %c8 = arith.constant 8 : index
    %c0_5 = arith.constant 0 : index
    %9 = vector.load %arg2[%c8, %c0_5] : memref<24x17xf32, #tpu.memory_space<vmem>>, vector<8x8xf32>
    %c8_6 = arith.constant 8 : index
    %c16_7 = arith.constant 16 : index
    %10 = vector.load %arg2[%c8_6, %c16_7] : memref<24x17xf32, #tpu.memory_space<vmem>>, vector<8x1xf32>
    %cst_8 = arith.constant dense<0.000000e+00> : vector<8x128xf32>
    %11 = tpu.matmul %9, %8, %cst_8 {dimension_numbers = #tpu.dot_dimension_numbers<[1], [0], [0], [1], [0, 0, 1, 1], [], []>} : vector<8x8xf32>, vector<8x128xf32>, vector<8x128xf32> -> vector<8x128xf32>
    %12 = vector.broadcast %10 : vector<8x1xf32> to vector<8x128xf32>
    %13 = arith.addf %11, %12 : vector<8x128xf32>
    %cst_9 = arith.constant 0.00999999977 : f32
    %14 = vector.broadcast %cst_9 : f32 to vector<8x128xf32>
    %15 = arith.mulf %14, %13 : vector<8x128xf32>
    %16 = arith.maximumf %13, %15 : vector<8x128xf32>
    %c16_10 = arith.constant 16 : index
    %c0_11 = arith.constant 0 : index
    %17 = vector.load %arg2[%c16_10, %c0_11] : memref<24x17xf32, #tpu.memory_space<vmem>>, vector<4x8xf32>
    %c16_12 = arith.constant 16 : index
    %c16_13 = arith.constant 16 : index
    %18 = vector.load %arg2[%c16_12, %c16_13] : memref<24x17xf32, #tpu.memory_space<vmem>>, vector<4x1xf32>
    %cst_14 = arith.constant dense<0.000000e+00> : vector<4x128xf32>
    %19 = tpu.matmul %17, %16, %cst_14 {dimension_numbers = #tpu.dot_dimension_numbers<[1], [0], [0], [1], [0, 0, 1, 1], [], []>} : vector<4x8xf32>, vector<8x128xf32>, vector<4x128xf32> -> vector<4x128xf32>
    %20 = vector.broadcast %18 : vector<4x1xf32> to vector<4x128xf32>
    %21 = arith.addf %19, %20 : vector<4x128xf32>
    %c0_15 = arith.constant 0 : index
    %c0_16 = arith.constant 0 : index
    %22 = vector.load %arg3[%c0_15, %c0_16] : memref<4x128xf32, #tpu.memory_space<vmem>>, vector<4x128xf32>
    tpu.vector_store %arg3[%c0_15, %c0_16], %21 {strides = array<i32>} : memref<4x128xf32, #tpu.memory_space<vmem>>, vector<4x128xf32>,
    return
  }
  func.func @transform_0(%arg0: i32) -> (i32, i32) {
    %c0_i32 = arith.constant 0 : i32
    %c0_i32_0 = arith.constant 0 : i32
    return %c0_i32, %arg0 : i32, i32
  }
  func.func @transform_1(%arg0: i32) -> (i32, i32) {
    %c0_i32 = arith.constant 0 : i32
    %c0_i32_0 = arith.constant 0 : i32
    %c0_i32_1 = arith.constant 0 : i32
    return %c0_i32, %c0_i32_0 : i32, i32
  }
  func.func @transform_2(%arg0: i32) -> (i32, i32) {
    %c0_i32 = arith.constant 0 : i32
    %c0_i32_0 = arith.constant 0 : i32
    return %c0_i32, %arg0 : i32, i32
  }
}

</mosaic_0001>

<bundles_post_ra>
// kernel: fcnet_forward.1
= control target key start
LH: loop header
LB: loop body
LE: loop exit
PB: predicated region body
PF: predicated region fallthrough
CT: control target
= control target key end

     0   :  { %s592_s9 = smov 0   ;;  %s594_s10 = smov 0   ;;  %s658_s0 = inlined_call_operand.vmem [shape: f32[16,384], index: 0, kind: input, shape index: {}]   ;;  %s659_s1 = inlined_call_operand.vmem [shape: f32[24,17], index: 1, kind: input, shape index: {}]   ;;  %s660_s2 = inlined_call_operand.vmem [shape: f32[4,384], index: 2, kind: output, shape index: {}]  }
   0x1   :  { %s596_s11 = smov 0  }
   0x2 LB: > { %s483_s12 = sadd.s32 4294967295, %s572_s11   ;;  %s609_s13 = sadd.s32 1, %s572_s11   ;;  %s572_s11 = sphi %s596_s11, %s663_s11   ;;  %s568_s10 = sphi %s594_s10, %s662_s10   ;;  %s564_s9 = sphi %s592_s9, %s661_s9  }
   0x3   : > { %s16_s14 = ssub.s32 %s572_s11, %s609_s13  ;;  %s19_s15 = sadd.s32 1, %s568_s10 }
   0x4   : > { %p17_p0 = scmp.eq.s32.totalorder %s16_s14, 0  ;;  %p26_p1 = scmp.ne.s32.totalorder %s568_s10, %s564_s9 }
   0x5   : > { %p27_p2 = scmp.eq.s32.totalorder %s572_s11, 0  ;;  %p486_p4 = scmp.ge.s32.totalorder %s572_s11, 3 }
   0x6   : > { %s618_s16 = scalar_select %p17_p0, %s568_s10, %s19_s15  }
   0x7   : > { %p28_p3 = por %p27_p2, %p26_p1  ;;  %102 = sbr.rel (%p486_p4) target bundleno = 17 (0x11), region = 20 }
   0xc   : > { %105 = sbr.rel (!%p28_p3) target bundleno = 17 (0x11), region = 24  ;;  %s107_s17 = sand.u32 (%p28_p3), 1, %s568_s10  }
   0xd   : > { %s488_s18 = sshll.u32 (%p28_p3), %s572_s11, 3  ;;  %s487_s19 = sshll.u32 (%p28_p3), %s107_s17, 4 }
   0xe   : > { %s111_s22 = scalar_lea.vmem (%p28_p3), %s658_s0, %s488_s18  ;;  %s109_s23 = scalar_lea.vmem (%p28_p3), [#allocation2], %s487_s19 }
   0xf   : > { %v142_v0 = vld [vmem:[%s111_s22] sm:$0xff] (%p28_p3)  ;;  %v144_v1 = vld [vmem:[%s111_s22 + $0x18] sm:$0xff] (%p28_p3) }
  0x10   : > { %143 = vst [vmem:[%s109_s23] sm:$0xff] (%p28_p3), %v142_v0  ;;  %145 = vst [vmem:[%s109_s23 + $0x8] sm:$0xff] (%p28_p3), %v144_v1 }
  0x11 PF: > { %p489_p5 = scmp.ge.s32.totalorder %s572_s11, 1  ;;  %p150_p6 = scmp.lt.s32.totalorder %s572_s11, 4 }
  0x13   : > { %p151_p7 = pnand %p489_p5, %p150_p6 }
  0x14   : > { %s157_s24 = sand.u32 (!%p151_p7), 1, %s564_s9   ;;  %p177_p8 = scmp.lt.s32.totalorder (!%p151_p7), %s483_s12, 2 }
  0x15   : > { %154 = sbr.rel (%p151_p7) target bundleno = 629 (0x275), region = 62  ;;  %s490_s25 = sshll.u32 (!%p151_p7), %s157_s24, 4 }
  0x16   : > { %s159_s28 = scalar_lea.vmem (!%p151_p7), [#allocation2], %s490_s25 }
  0x1a   : > { %v574_v2 = vmov 0.0   ;;  %vm575_vm0 = vmmov 0   ;;  %v183_v3 = vld [vmem:[%s659_s1] sm:$0xff]  ;;  %v576_v4 = vmov 16   ;;  %v182_v5 = vld [vmem:[%s159_s28 + $0x8] sm:$0xff]  ;;  %vm189_vm1 = vcmask 130048  }
  0x1b   : > { %504 = vmatprep.subr.mxu0 %v574_v2  ;;  %508 = vmatprep.mubr.msk.f32.mxu0 %vm575_vm0, %v574_v2  ;;  %v181_v6 = vld [vmem:[%s159_s28] sm:$0xff]  ;;  %v264_v7 = vld [vmem:[%s659_s1 + $0x8] sm:$0xff]  ;;  %vm270_vm2 = vcmask 64512   ;;  %s665_s12 = smov (!%p177_p8, %s483_s12), 2 }
  0x1c   : > { %548 = vset.pattern.permute.xlu0 %v576_v4  ;;  %511 = vmatprep.subr.mxu1 %v574_v2  ;;  %v345_v14 = vld [vmem:[%s659_s1 + $0x10] sm:$0xf]  ;;  %s491_s5 = sshll.u32 %s665_s12, 2 }
  0x1d   : > { %186 = vperm.xlu0 %548, %v183_v3   ;;  %513 = vmatprep.mubr.msk.f32.mxu1 %vm575_vm0, %v574_v2  ;;  %s180_s8 = scalar_lea.vmem %s660_s2, %s491_s5 }
  0x1e   : > { %505 = vmatpush3.msra.mxu0 %v182_v5  ;;  %549 = vset.pattern.permute.xlu1 %v576_v4 }
  0x1f   : > { %506 = vmatprep.subr.mxu0 %v574_v2  ;;  %348 = vperm.xlu1 %549, %v345_v14  }
  0x20   : > { %507 = vmatpush3.msra.mxu0 %v181_v6 }
  0x21   : > { %509 = vmatmul.mubr.msk.f32.vlgmr.msra.gmra.mxu0 %vm189_vm1, %v183_v3  ;;  %267 = vperm.xlu0 %548, %v264_v7  }
  0x98   : > { %v187_v8 = vpop.permute.xlu0 %186 }
  0x9a   : > { %v349_v21 = vpop.permute.xlu1 %348 }
  0x9c   : > { %v268_v15 = vpop.permute.xlu0 %267 }
  0xe1   : > { %v258_v9 = vpop.f32.mrf.mxu0 }
  0xe2   : > { %v259_v10 = vadd.f32 %v258_v9, %v187_v8 }
  0xe3   : > { %v510_v11 = vpop.f32.mrf.mxu0 }
  0xe4   : > { %v262_v12 = vmul.f32 0.01, %v259_v10 }
  0xe6   : > { %v263_v13 = vmax.f32 %v259_v10, %v262_v12 }
  0xe8   : > { %512 = vmatpush3.msra.mxu1 %v263_v13 }
  0xe9   : > { %514 = vmatmul.mubr.msk.f32.vlgmr.msra.gmra.mxu1 %vm270_vm2, %v264_v7  ;;  %516 = vmatprep.subr.mxu1 %v574_v2 }
  0xea   : > { %518 = vmatprep.mubr.msk.f32.mxu1 %vm575_vm0, %v574_v2 }
 0x1a9   : > { %v339_v16 = vpop.f32.mrf.mxu1 }
 0x1aa   : > { %v340_v17 = vadd.f32 %v339_v16, %v268_v15 }
 0x1ab   : > { %v515_v18 = vpop.f32.mrf.mxu1 }
 0x1ac   : > { %v343_v19 = vmul.f32 0.01, %v340_v17 }
 0x1ae   : > { %v344_v20 = vmax.f32 %v340_v17, %v343_v19 }
 0x1b0   : > { %517 = vmatpush3.msra.mxu1 %v344_v20 }
 0x1b1   : > { %519 = vmatmul.mubr.msk.f32.vlgmr.msra.gmra.mxu1 %vm270_vm2, %v345_v14 }
 0x271   : > { %v419_v22 = vpop.f32.mrf.mxu1 }
 0x272   : > { %v420_v23 = vadd.f32 %v419_v22, %v349_v21 }
 0x273   : > { %v520_v24 = vpop.f32.mrf.mxu1 }
 0x274   : > { %423 = vst [vmem:[%s180_s8] sm:$0xf] %v420_v23 }
 0x275 PF: > { %p9_p9 = scmp.ge.s32.totalorder %s609_s13, 5   ;;  %s661_s9 = smov %s568_s10 }
 0x276   : > { %s662_s10 = smov %s618_s16  ;;  %s663_s11 = smov %s609_s13 }
 0x277   :  { %11 = sbr.rel (!%p9_p9) target bundleno = 2 (0x2), region = 101 }

</bundles_post_ra>
